<compile_context>
chip_gen: v6e
topology: v6e:2x2x1
jax: 0.10.0
libtpu: 0.0.40
codegen_flags: <defaults>
</compile_context>

<pallas_src>
import numpy as np
import jax
import jax.numpy as jnp
from jax.experimental import pallas as pl
from jax.experimental.pallas import tpu as pltpu

# ---------------- model config ------------------------------------------------
N, C, H, W = 2, 32, 8, 8          # in_ch = 32 -> ratio 16 gives CMID = 2
RATIO = 16
CMID = C // RATIO                 # 2
KSA = 7                           # spatial-attention kernel size
PAD = 3
BN_EPS = 1e-5

HW = H * W                        # 64 pixels per image
NHW = N * HW                      # 128 pixels total -> exactly one full lane dim


# ---------------- per-image Toeplitz lowering of the padded 7x7 conv ----------
# conv[n, p_out] = sum_{pool, p_in} maps[n, pool*HW + p_in] * T[pool*HW + p_in, p_out]
# T is batch-independent -> shape (2*HW, HW) = (128, 64).
# Built via a constant-index gather (no scatter): TAP_MAP holds, per (row, col),
# an index into the flattened conv weight; a sentinel index points at a zero pad.
_SENTINEL = 2 * KSA * KSA


def _build_tap_map():
    tap_map = np.full((2 * HW, HW), _SENTINEL, dtype=np.int32)
    pool, hi, wi, ho, wo = np.meshgrid(
        np.arange(2), np.arange(H), np.arange(W), np.arange(H), np.arange(W),
        indexing="ij")
    kh = hi - ho + PAD
    kw = wi - wo + PAD
    valid = (kh >= 0) & (kh < KSA) & (kw >= 0) & (kw < KSA)
    src = (pool * HW + hi * W + wi)[valid]
    dst = (ho * W + wo)[valid]
    tap = (pool * KSA * KSA + kh * KSA + kw)[valid]
    tap_map[src, dst] = tap
    return tap_map


_TAP_MAP = jnp.asarray(_build_tap_map())                      # (2*HW, HW) int32

# constant matrices that push broadcast / average work onto the (idle) MXU
_AVGM_NP = np.zeros((NHW, N), np.float32)                     # per-image avg pool
for _n in range(N):
    _AVGM_NP[_n * HW:(_n + 1) * HW, _n] = 1.0 / HW
_SEL_NP = np.zeros((N, NHW), np.float32)                      # per-image 0/1 selector
for _n in range(N):
    _SEL_NP[_n, _n * HW:(_n + 1) * HW] = 1.0
_AVGM = jnp.asarray(_AVGM_NP)
_SEL = jnp.asarray(_SEL_NP)
_INVC = jnp.full((1, C), 1.0 / C, jnp.float32)                # cross-channel mean


def build_spatial_toeplitz(w_sa):
    """w_sa: (2, 7, 7) conv weight -> (2*HW, HW); per-image conv = maps @ T."""
    w_ext = jnp.concatenate(
        [w_sa.reshape(-1).astype(jnp.float32), jnp.zeros((1,), jnp.float32)])
    return w_ext[_TAP_MAP]                                     # dense gather, no scatter


# ---------------- kernel -------------------------------------------------------
def attention_kernel(x_ref, w1_ref, w2_ref, avgm_ref, sel_ref, invc_ref,
                     tsa_hbm_ref, wc1_ref, wc2_ref, bnb_ref,
                     o_ref, tsa_vmem, tsa_sem):
    """Single invocation over the whole (tiny) problem.

    x_ref   : (C, N*H*W)   VMEM  activations, channels on sublanes, pixels on lanes
    w1_ref  : (CMID, C)    VMEM  fc1 weight
    w2_ref  : (C, CMID)    VMEM  fc2 weight
    avgm_ref: (N*H*W, N)   VMEM  per-image average-pool matrix (entries 1/HW)
    sel_ref : (N, N*H*W)   VMEM  per-image 0/1 selection matrix
    invc_ref: (1, C)       VMEM  constant row of 1/C (cross-channel mean)
    tsa_hbm : (2*H*W, H*W) ANY   per-image Toeplitz form of the 7x7 spatial conv
    wc1_ref : (C, C)       VMEM  tail 1x1-conv weight (x3 half, BN scale folded)
    wc2_ref : (C, C)       VMEM  tail 1x1-conv weight (x  half, BN scale folded)
    bnb_ref : (C, 1)       VMEM  folded BN shift
    o_ref   : (C, N*H*W)   VMEM
    """
    # Kick off the Toeplitz DMA now; it overlaps the channel-attention phase.
    tsa_cp = pltpu.make_async_copy(tsa_hbm_ref, tsa_vmem, tsa_sem)
    tsa_cp.start()

    x = x_ref[...]                                            # (C, NHW) f32

    # ---------------- Channel attention (fused avg/max MLP) ----------------
    pools_avg = jnp.dot(x, avgm_ref[...],
                        preferred_element_type=jnp.float32)   # (C, N) on MXU
    pools_max = jnp.concatenate(
        [jnp.max(x[:, n * HW:(n + 1) * HW], axis=1, keepdims=True)
         for n in range(N)], axis=1)                          # (C, N) on XLU
    pools = jnp.concatenate([pools_avg, pools_max], axis=1)   # (C, 2N)

    h = jnp.dot(w1_ref[...], pools,
                preferred_element_type=jnp.float32)           # (CMID, 2N)
    h = jnp.maximum(h, 0.0)
    mlp = jnp.dot(w2_ref[...], h,
                  preferred_element_type=jnp.float32)         # (C, 2N)
    ca = jax.nn.sigmoid(mlp[:, :N] + mlp[:, N:2 * N])         # (C, N)

    # broadcast ca over each image's pixels with one MXU dot (no lane broadcasts)
    ca_full = jnp.dot(ca, sel_ref[...],
                      preferred_element_type=jnp.float32)     # (C, NHW)
    x1 = x * ca_full                                          # channel-attended map

    # ---------------- Spatial attention: 7x7 conv as one MXU matmul --------
    avg_nhw = jnp.dot(invc_ref[...], x1,
                      preferred_element_type=jnp.float32)     # (1, NHW) cross-chan mean
    max_nhw = jnp.max(x1, axis=0, keepdims=True)              # (1, NHW) cross-chan max
    rows = [jnp.concatenate([avg_nhw[:, n * HW:(n + 1) * HW],
                             max_nhw[:, n * HW:(n + 1) * HW]], axis=1)
            for n in range(N)]                                # each (1, 2*HW)
    maps = jnp.concatenate(rows, axis=0)                      # (N, 2*HW)

    tsa_cp.wait()                                             # DMA fully hidden above
    conv = jnp.dot(maps, tsa_vmem[...],
                   preferred_element_type=jnp.float32)        # (N, HW)
    sa = jax.nn.sigmoid(conv)                                 # (N, HW)
    sa_nhw = jnp.concatenate([sa[n:n + 1, :] for n in range(N)],
                             axis=1)                          # (1, NHW)
    sa_full = jnp.broadcast_to(sa_nhw, (C, NHW))              # sublane broadcast

    # matches PyTorch: x2_ = sigmoid(x * sa); x3 = x2_ * sa   (applied to raw x)
    z = x * sa_full
    x2_ = 0.5 * (jnp.tanh(0.5 * z) + 1.0)                     # sigmoid, single EUP op/elem
    x3 = x2_ * sa_full

    # ---- tail 1x1 conv (BN scale folded into wc1/wc2) + shift + ReLU + residual
    y = jnp.dot(wc1_ref[...], x3, preferred_element_type=jnp.float32)
    y = y + jnp.dot(wc2_ref[...], x, preferred_element_type=jnp.float32)
    y = y + bnb_ref[...]                                      # folded BN shift
    y = jnp.maximum(y, 0.0)
    o_ref[...] = y + x                                        # residual, full-lane stores


# ---------------- wrapper -------------------------------------------------------
@jax.jit
def attention_pallas(x_nchw, w1, w2, w_sa, wc, bn_scale, bn_shift):
    # NCHW -> (C, N*H*W): channels on sublanes, pixels on lanes (lane-dense blocks)
    x_t = jnp.transpose(x_nchw, (1, 0, 2, 3)).reshape(C, NHW).astype(jnp.float32)

    tsa = build_spatial_toeplitz(w_sa)                        # (2*HW, HW), gather-built
    wc_s = bn_scale[:, None] * wc.astype(jnp.float32)         # fold BN scale into conv
    wc1 = wc_s[:, :C]                                         # multiplies x3
    wc2 = wc_s[:, C:]                                         # multiplies x (residual cat half)

    out_t = pl.pallas_call(
        attention_kernel,
        out_shape=jax.ShapeDtypeStruct((C, NHW), jnp.float32),
        grid_spec=pltpu.PrefetchScalarGridSpec(
            num_scalar_prefetch=0,
            grid=(1,),
            in_specs=[
                pl.BlockSpec((C, NHW), lambda i: (0, 0)),         # x
                pl.BlockSpec((CMID, C), lambda i: (0, 0)),        # w1
                pl.BlockSpec((C, CMID), lambda i: (0, 0)),        # w2
                pl.BlockSpec((NHW, N), lambda i: (0, 0)),         # avg-pool matrix
                pl.BlockSpec((N, NHW), lambda i: (0, 0)),         # selection matrix
                pl.BlockSpec((1, C), lambda i: (0, 0)),           # 1/C row
                pl.BlockSpec(memory_space=pl.ANY),                # Toeplitz (manual DMA)
                pl.BlockSpec((C, C), lambda i: (0, 0)),           # wc1 (scaled)
                pl.BlockSpec((C, C), lambda i: (0, 0)),           # wc2 (scaled)
                pl.BlockSpec((C, 1), lambda i: (0, 0)),           # bn shift
            ],
            out_specs=pl.BlockSpec((C, NHW), lambda i: (0, 0)),
            scratch_shapes=[
                pltpu.VMEM((2 * HW, HW), jnp.float32),            # Toeplitz landing buffer
                pltpu.SemaphoreType.DMA,                          # its completion semaphore
            ],
        ),
        compiler_params=pltpu.CompilerParams(
            dimension_semantics=("arbitrary",)),
    )(x_t, w1.astype(jnp.float32), w2.astype(jnp.float32), _AVGM, _SEL, _INVC,
      tsa, wc1, wc2, bn_shift.reshape(C, 1).astype(jnp.float32))

    # (C, N*H*W) -> NCHW
    return jnp.transpose(out_t.reshape(C, N, H, W), (1, 0, 2, 3))


# ---------------- pure-JAX reference (for correctness check) -------------------
def attention_ref(x, w1, w2, w_sa, wc, bn_scale, bn_shift):
    P = jax.lax.Precision.HIGHEST
    avg = jnp.mean(x, axis=(2, 3), keepdims=True)
    mx = jnp.max(x, axis=(2, 3), keepdims=True)

    def mlp(v):                                              # (N, C, 1, 1)
        h = jnp.einsum('nchw,mc->nmhw', v, w1, precision=P)
        h = jax.nn.relu(h)
        return jnp.einsum('nmhw,cm->nchw', h, w2, precision=P)

    ca = jax.nn.sigmoid(mlp(avg) + mlp(mx))                  # (N, C, 1, 1)
    x1 = x * ca
    avg_map = jnp.mean(x1, axis=1, keepdims=True)
    max_map = jnp.max(x1, axis=1, keepdims=True)
    cat2 = jnp.concatenate([avg_map, max_map], axis=1)       # (N, 2, H, W)
    conv = jax.lax.conv_general_dilated(
        cat2, w_sa.reshape(1, 2, KSA, KSA), (1, 1), ((PAD, PAD), (PAD, PAD)),
        dimension_numbers=('NCHW', 'OIHW', 'NCHW'), precision=P)
    sa = jax.nn.sigmoid(conv)                                # (N, 1, H, W)
    x2_ = jax.nn.sigmoid(x * sa)
    x3 = x2_ * sa
    cat = jnp.concatenate([x3, x], axis=1)                   # (N, 2C, H, W)
    y = jax.lax.conv_general_dilated(
        cat, wc.reshape(C, 2 * C, 1, 1), (1, 1), ((0, 0), (0, 0)),
        dimension_numbers=('NCHW', 'OIHW', 'NCHW'), precision=P)
    y = y * bn_scale.reshape(1, C, 1, 1) + bn_shift.reshape(1, C, 1, 1)
    y = jax.nn.relu(y)
    return y + x


if __name__ == "__main__":
    key = jax.random.PRNGKey(0)
    kx, k1, k2, k3, k4 = jax.random.split(key, 5)

    # input (NCHW, as PyTorch would feed it)
    x = jax.random.normal(kx, (N, C, H, W), dtype=jnp.float32)

    # deterministic kaiming_normal_(a=1)-style init: std = 1/sqrt(fan_in)
    w1 = jax.random.normal(k1, (CMID, C), jnp.float32) / jnp.sqrt(C * 1.0)       # fc1
    w2 = jax.random.normal(k2, (C, CMID), jnp.float32) / jnp.sqrt(CMID * 1.0)    # fc2
    w_sa = jax.random.normal(k3, (2, KSA, KSA), jnp.float32) / jnp.sqrt(2.0 * KSA * KSA)
    wc = jax.random.normal(k4, (C, 2 * C), jnp.float32) / jnp.sqrt(2.0 * C)      # tail 1x1

    # BatchNorm (eval mode, default params) folded into scale/shift
    gamma = jnp.ones((C,), jnp.float32)
    beta = jnp.zeros((C,), jnp.float32)
    run_mean = jnp.zeros((C,), jnp.float32)
    run_var = jnp.ones((C,), jnp.float32)
    bn_scale = gamma / jnp.sqrt(run_var + BN_EPS)            # (C,)
    bn_shift = beta - run_mean * bn_scale                    # (C,)

    out = attention_pallas(x, w1, w2, w_sa, wc, bn_scale, bn_shift)
    out = jax.block_until_ready(out)

    ref = jax.block_until_ready(
        attention_ref(x, w1, w2, w_sa, wc, bn_scale, bn_shift))

    assert out.shape == (N, C, H, W), out.shape
    err = float(jnp.max(jnp.abs(out - ref)))
    assert jnp.allclose(out, ref, atol=1e-3, rtol=1e-3), err

    print("KERNEL_OK")
</pallas_src>

<mosaic_0001>
module attributes {stable_mosaic.version = 11 : i64} {
  func.func @attention_kernel(%arg0: i32, %arg1: memref<32x128xf32, #tpu.memory_space<vmem>>, %arg2: memref<2x32xf32, #tpu.memory_space<vmem>>, %arg3: memref<32x2xf32, #tpu.memory_space<vmem>>, %arg4: memref<128x2xf32, #tpu.memory_space<vmem>>, %arg5: memref<2x128xf32, #tpu.memory_space<vmem>>, %arg6: memref<1x32xf32, #tpu.memory_space<vmem>>, %arg7: memref<128x64xf32, #tpu.memory_space<any>>, %arg8: memref<32x32xf32, #tpu.memory_space<vmem>>, %arg9: memref<32x32xf32, #tpu.memory_space<vmem>>, %arg10: memref<32x1xf32, #tpu.memory_space<vmem>>, %arg11: memref<32x128xf32, #tpu.memory_space<vmem>>, %arg12: memref<128x64xf32, #tpu.memory_space<vmem>>, %arg13: memref<!tpu.dma_semaphore, #tpu.memory_space<semaphore_mem>>) attributes {dimension_semantics = [#tpu.dimension_semantics<arbitrary>], iteration_bounds = array<i64: 1>, scalar_prefetch = 0 : i64, scratch_operands = 2 : i64, tpu.core_type = #tpu.core_type<tc>, window_params = [{pipeline_mode = #tpu.pipeline_mode<synchronous>, transform_indices = @transform_0, window_bounds = array<i64: 32, 128>}, {pipeline_mode = #tpu.pipeline_mode<synchronous>, transform_indices = @transform_1, window_bounds = array<i64: 2, 32>}, {pipeline_mode = #tpu.pipeline_mode<synchronous>, transform_indices = @transform_2, window_bounds = array<i64: 32, 2>}, {pipeline_mode = #tpu.pipeline_mode<synchronous>, transform_indices = @transform_3, window_bounds = array<i64: 128, 2>}, {pipeline_mode = #tpu.pipeline_mode<synchronous>, transform_indices = @transform_4, window_bounds = array<i64: 2, 128>}, {pipeline_mode = #tpu.pipeline_mode<synchronous>, transform_indices = @transform_5, window_bounds = array<i64: 1, 32>}, {}, {pipeline_mode = #tpu.pipeline_mode<synchronous>, transform_indices = @transform_7, window_bounds = array<i64: 32, 32>}, {pipeline_mode = #tpu.pipeline_mode<synchronous>, transform_indices = @transform_8, window_bounds = array<i64: 32, 32>}, {pipeline_mode = #tpu.pipeline_mode<synchronous>, transform_indices = @transform_9, window_bounds = array<i64: 32, 1>}, {pipeline_mode = #tpu.pipeline_mode<synchronous>, transform_indices = @transform_10, window_bounds = array<i64: 32, 128>}]} {
    tpu.enqueue_dma source(%arg7 : memref<128x64xf32, #tpu.memory_space<any>>) target(%arg12 : memref<128x64xf32, #tpu.memory_space<vmem>>) target_semaphore(%arg13 : memref<!tpu.dma_semaphore, #tpu.memory_space<semaphore_mem>>)
    %c0 = arith.constant 0 : index
    %c0_0 = arith.constant 0 : index
    %0 = vector.load %arg1[%c0, %c0_0] : memref<32x128xf32, #tpu.memory_space<vmem>>, vector<32x128xf32>
    %c0_1 = arith.constant 0 : index
    %c0_2 = arith.constant 0 : index
    %1 = vector.load %arg4[%c0_1, %c0_2] : memref<128x2xf32, #tpu.memory_space<vmem>>, vector<128x2xf32>
    %cst = arith.constant dense<0.000000e+00> : vector<32x2xf32>
    %2 = tpu.matmul %0, %1, %cst {dimension_numbers = #tpu.dot_dimension_numbers<[1], [0], [0], [1], [0, 0, 1, 1], [], []>} : vector<32x128xf32>, vector<128x2xf32>, vector<32x2xf32> -> vector<32x2xf32>
    %3 = vector.extract_strided_slice %0 {offsets = [0, 0], sizes = [32, 64], strides = [1, 1]} : vector<32x128xf32> to vector<32x64xf32>
    %cst_3 = arith.constant dense<0xFF800000> : vector<32xf32>
    %4 = vector.multi_reduction <maximumf>, %3, %cst_3 [1] : vector<32x64xf32> to vector<32xf32>
    %5 = vector.shape_cast %4 : vector<32xf32> to vector<32x1xf32>
    %6 = vector.extract_strided_slice %0 {offsets = [0, 64], sizes = [32, 64], strides = [1, 1]} : vector<32x128xf32> to vector<32x64xf32>
    %cst_4 = arith.constant dense<0xFF800000> : vector<32xf32>
    %7 = vector.multi_reduction <maximumf>, %6, %cst_4 [1] : vector<32x64xf32> to vector<32xf32>
    %8 = vector.shape_cast %7 : vector<32xf32> to vector<32x1xf32>
    %9 = tpu.concatenate %5, %8 in 1 : vector<32x1xf32>, vector<32x1xf32> -> vector<32x2xf32>
    %10 = tpu.concatenate %2, %9 in 1 : vector<32x2xf32>, vector<32x2xf32> -> vector<32x4xf32>
    %c0_5 = arith.constant 0 : index
    %c0_6 = arith.constant 0 : index
    %11 = vector.load %arg2[%c0_5, %c0_6] : memref<2x32xf32, #tpu.memory_space<vmem>>, vector<2x32xf32>
    %cst_7 = arith.constant dense<0.000000e+00> : vector<2x4xf32>
    %12 = tpu.matmul %11, %10, %cst_7 {dimension_numbers = #tpu.dot_dimension_numbers<[1], [0], [0], [1], [0, 0, 1, 1], [], []>} : vector<2x32xf32>, vector<32x4xf32>, vector<2x4xf32> -> vector<2x4xf32>
    %cst_8 = arith.constant 0.000000e+00 : f32
    %13 = vector.broadcast %cst_8 : f32 to vector<2x4xf32>
    %14 = arith.maximumf %12, %13 : vector<2x4xf32>
    %c0_9 = arith.constant 0 : index
    %c0_10 = arith.constant 0 : index
    %15 = vector.load %arg3[%c0_9, %c0_10] : memref<32x2xf32, #tpu.memory_space<vmem>>, vector<32x2xf32>
    %cst_11 = arith.constant dense<0.000000e+00> : vector<32x4xf32>
    %16 = tpu.matmul %15, %14, %cst_11 {dimension_numbers = #tpu.dot_dimension_numbers<[1], [0], [0], [1], [0, 0, 1, 1], [], []>} : vector<32x2xf32>, vector<2x4xf32>, vector<32x4xf32> -> vector<32x4xf32>
    %17 = vector.extract_strided_slice %16 {offsets = [0, 0], sizes = [32, 2], strides = [1, 1]} : vector<32x4xf32> to vector<32x2xf32>
    %18 = vector.extract_strided_slice %16 {offsets = [0, 2], sizes = [32, 2], strides = [1, 1]} : vector<32x4xf32> to vector<32x2xf32>
    %19 = arith.addf %17, %18 : vector<32x2xf32>
    %20 = arith.negf %19 : vector<32x2xf32>
    %21 = math.exp %20 : vector<32x2xf32>
    %cst_12 = arith.constant 1.000000e+00 : f32
    %22 = vector.broadcast %cst_12 : f32 to vector<32x2xf32>
    %23 = arith.addf %22, %21 : vector<32x2xf32>
    %24 = arith.divf %22, %23 : vector<32x2xf32>
    %c0_13 = arith.constant 0 : index
    %c0_14 = arith.constant 0 : index
    %25 = vector.load %arg5[%c0_13, %c0_14] : memref<2x128xf32, #tpu.memory_space<vmem>>, vector<2x128xf32>
    %cst_15 = arith.constant dense<0.000000e+00> : vector<32x128xf32>
    %26 = tpu.matmul %24, %25, %cst_15 {dimension_numbers = #tpu.dot_dimension_numbers<[1], [0], [0], [1], [0, 0, 1, 1], [], []>} : vector<32x2xf32>, vector<2x128xf32>, vector<32x128xf32> -> vector<32x128xf32>
    %27 = arith.mulf %0, %26 : vector<32x128xf32>
    %c0_16 = arith.constant 0 : index
    %c0_17 = arith.constant 0 : index
    %28 = vector.load %arg6[%c0_16, %c0_17] : memref<1x32xf32, #tpu.memory_space<vmem>>, vector<1x32xf32>
    %cst_18 = arith.constant dense<0.000000e+00> : vector<1x128xf32>
    %29 = tpu.matmul %28, %27, %cst_18 {dimension_numbers = #tpu.dot_dimension_numbers<[1], [0], [0], [1], [0, 0, 1, 1], [], []>} : vector<1x32xf32>, vector<32x128xf32>, vector<1x128xf32> -> vector<1x128xf32>
    %cst_19 = arith.constant dense<0xFF800000> : vector<128xf32>
    %30 = vector.multi_reduction <maximumf>, %27, %cst_19 [0] : vector<32x128xf32> to vector<128xf32>
    %31 = vector.shape_cast %30 : vector<128xf32> to vector<1x128xf32>
    %32 = vector.extract_strided_slice %29 {offsets = [0, 0], sizes = [1, 64], strides = [1, 1]} : vector<1x128xf32> to vector<1x64xf32>
    %33 = vector.extract_strided_slice %31 {offsets = [0, 0], sizes = [1, 64], strides = [1, 1]} : vector<1x128xf32> to vector<1x64xf32>
    %34 = tpu.concatenate %32, %33 in 1 : vector<1x64xf32>, vector<1x64xf32> -> vector<1x128xf32>
    %35 = vector.extract_strided_slice %29 {offsets = [0, 64], sizes = [1, 64], strides = [1, 1]} : vector<1x128xf32> to vector<1x64xf32>
    %36 = vector.extract_strided_slice %31 {offsets = [0, 64], sizes = [1, 64], strides = [1, 1]} : vector<1x128xf32> to vector<1x64xf32>
    %37 = tpu.concatenate %35, %36 in 1 : vector<1x64xf32>, vector<1x64xf32> -> vector<1x128xf32>
    %38 = tpu.concatenate %34, %37 in 0 : vector<1x128xf32>, vector<1x128xf32> -> vector<2x128xf32>
    tpu.wait_dma2 semaphore(%arg13 : memref<!tpu.dma_semaphore, #tpu.memory_space<semaphore_mem>>) src(%arg7 : memref<128x64xf32, #tpu.memory_space<any>>) dst(%arg12 : memref<128x64xf32, #tpu.memory_space<vmem>>)
    %c0_20 = arith.constant 0 : index
    %c0_21 = arith.constant 0 : index
    %39 = vector.load %arg12[%c0_20, %c0_21] : memref<128x64xf32, #tpu.memory_space<vmem>>, vector<128x64xf32>
    %cst_22 = arith.constant dense<0.000000e+00> : vector<2x64xf32>
    %40 = tpu.matmul %38, %39, %cst_22 {dimension_numbers = #tpu.dot_dimension_numbers<[1], [0], [0], [1], [0, 0, 1, 1], [], []>} : vector<2x128xf32>, vector<128x64xf32>, vector<2x64xf32> -> vector<2x64xf32>
    %41 = arith.negf %40 : vector<2x64xf32>
    %42 = math.exp %41 : vector<2x64xf32>
    %cst_23 = arith.constant 1.000000e+00 : f32
    %43 = vector.broadcast %cst_23 : f32 to vector<2x64xf32>
    %44 = arith.addf %43, %42 : vector<2x64xf32>
    %45 = arith.divf %43, %44 : vector<2x64xf32>
    %46 = vector.extract_strided_slice %45 {offsets = [0, 0], sizes = [1, 64], strides = [1, 1]} : vector<2x64xf32> to vector<1x64xf32>
    %47 = vector.extract_strided_slice %45 {offsets = [1, 0], sizes = [1, 64], strides = [1, 1]} : vector<2x64xf32> to vector<1x64xf32>
    %48 = tpu.concatenate %46, %47 in 1 : vector<1x64xf32>, vector<1x64xf32> -> vector<1x128xf32>
    %49 = vector.shape_cast %48 : vector<1x128xf32> to vector<1x128xf32>
    %50 = vector.broadcast %49 : vector<1x128xf32> to vector<32x128xf32>
    %51 = arith.mulf %0, %50 : vector<32x128xf32>
    %cst_24 = arith.constant 5.000000e-01 : f32
    %52 = vector.broadcast %cst_24 : f32 to vector<32x128xf32>
    %53 = arith.mulf %52, %51 : vector<32x128xf32>
    %54 = math.tanh %53 : vector<32x128xf32>
    %cst_25 = arith.constant 1.000000e+00 : f32
    %55 = vector.broadcast %cst_25 : f32 to vector<32x128xf32>
    %56 = arith.addf %54, %55 : vector<32x128xf32>
    %cst_26 = arith.constant 5.000000e-01 : f32
    %57 = vector.broadcast %cst_26 : f32 to vector<32x128xf32>
    %58 = arith.mulf %57, %56 : vector<32x128xf32>
    %59 = arith.mulf %58, %50 : vector<32x128xf32>
    %c0_27 = arith.constant 0 : index
    %c0_28 = arith.constant 0 : index
    %60 = vector.load %arg8[%c0_27, %c0_28] : memref<32x32xf32, #tpu.memory_space<vmem>>, vector<32x32xf32>
    %cst_29 = arith.constant dense<0.000000e+00> : vector<32x128xf32>
    %61 = tpu.matmul %60, %59, %cst_29 {dimension_numbers = #tpu.dot_dimension_numbers<[1], [0], [0], [1], [0, 0, 1, 1], [], []>} : vector<32x32xf32>, vector<32x128xf32>, vector<32x128xf32> -> vector<32x128xf32>
    %c0_30 = arith.constant 0 : index
    %c0_31 = arith.constant 0 : index
    %62 = vector.load %arg9[%c0_30, %c0_31] : memref<32x32xf32, #tpu.memory_space<vmem>>, vector<32x32xf32>
    %cst_32 = arith.constant dense<0.000000e+00> : vector<32x128xf32>
    %63 = tpu.matmul %62, %0, %cst_32 {dimension_numbers = #tpu.dot_dimension_numbers<[1], [0], [0], [1], [0, 0, 1, 1], [], []>} : vector<32x32xf32>, vector<32x128xf32>, vector<32x128xf32> -> vector<32x128xf32>
    %64 = arith.addf %61, %63 : vector<32x128xf32>
    %c0_33 = arith.constant 0 : index
    %c0_34 = arith.constant 0 : index
    %65 = vector.load %arg10[%c0_33, %c0_34] : memref<32x1xf32, #tpu.memory_space<vmem>>, vector<32x1xf32>
    %66 = vector.broadcast %65 : vector<32x1xf32> to vector<32x128xf32>
    %67 = arith.addf %64, %66 : vector<32x128xf32>
    %cst_35 = arith.constant 0.000000e+00 : f32
    %68 = vector.broadcast %cst_35 : f32 to vector<32x128xf32>
    %69 = arith.maximumf %67, %68 : vector<32x128xf32>
    %70 = arith.addf %69, %0 : vector<32x128xf32>
    %c0_36 = arith.constant 0 : index
    %c0_37 = arith.constant 0 : index
    %71 = vector.load %arg11[%c0_36, %c0_37] : memref<32x128xf32, #tpu.memory_space<vmem>>, vector<32x128xf32>
    tpu.vector_store %arg11[%c0_36, %c0_37], %70 {strides = array<i32>} : memref<32x128xf32, #tpu.memory_space<vmem>>, vector<32x128xf32>,
    return
  }
  func.func @transform_0(%arg0: i32) -> (i32, i32) {
    %c0_i32 = arith.constant 0 : i32
    %c0_i32_0 = arith.constant 0 : i32
    %c0_i32_1 = arith.constant 0 : i32
    return %c0_i32, %c0_i32_0 : i32, i32
  }
  func.func @transform_1(%arg0: i32) -> (i32, i32) {
    %c0_i32 = arith.constant 0 : i32
    %c0_i32_0 = arith.constant 0 : i32
    %c0_i32_1 = arith.constant 0 : i32
    return %c0_i32, %c0_i32_0 : i32, i32
  }
  func.func @transform_2(%arg0: i32) -> (i32, i32) {
    %c0_i32 = arith.constant 0 : i32
    %c0_i32_0 = arith.constant 0 : i32
    %c0_i32_1 = arith.constant 0 : i32
    return %c0_i32, %c0_i32_0 : i32, i32
  }
  func.func @transform_3(%arg0: i32) -> (i32, i32) {
    %c0_i32 = arith.constant 0 : i32
    %c0_i32_0 = arith.constant 0 : i32
    %c0_i32_1 = arith.constant 0 : i32
    return %c0_i32, %c0_i32_0 : i32, i32
  }
  func.func @transform_4(%arg0: i32) -> (i32, i32) {
    %c0_i32 = arith.constant 0 : i32
    %c0_i32_0 = arith.constant 0 : i32
    %c0_i32_1 = arith.constant 0 : i32
    return %c0_i32, %c0_i32_0 : i32, i32
  }
  func.func @transform_5(%arg0: i32) -> (i32, i32) {
    %c0_i32 = arith.constant 0 : i32
    %c0_i32_0 = arith.constant 0 : i32
    %c0_i32_1 = arith.constant 0 : i32
    return %c0_i32, %c0_i32_0 : i32, i32
  }
  func.func @transform_7(%arg0: i32) -> (i32, i32) {
    %c0_i32 = arith.constant 0 : i32
    %c0_i32_0 = arith.constant 0 : i32
    %c0_i32_1 = arith.constant 0 : i32
    return %c0_i32, %c0_i32_0 : i32, i32
  }
  func.func @transform_8(%arg0: i32) -> (i32, i32) {
    %c0_i32 = arith.constant 0 : i32
    %c0_i32_0 = arith.constant 0 : i32
    %c0_i32_1 = arith.constant 0 : i32
    return %c0_i32, %c0_i32_0 : i32, i32
  }
  func.func @transform_9(%arg0: i32) -> (i32, i32) {
    %c0_i32 = arith.constant 0 : i32
    %c0_i32_0 = arith.constant 0 : i32
    %c0_i32_1 = arith.constant 0 : i32
    return %c0_i32, %c0_i32_0 : i32, i32
  }
  func.func @transform_10(%arg0: i32) -> (i32, i32) {
    %c0_i32 = arith.constant 0 : i32
    %c0_i32_0 = arith.constant 0 : i32
    %c0_i32_1 = arith.constant 0 : i32
    return %c0_i32, %c0_i32_0 : i32, i32
  }
}

</mosaic_0001>

<bundles_post_ra>
// kernel: attention_pallas.1
= control target key start
LH: loop header
LB: loop body
LE: loop exit
PB: predicated region body
PF: predicated region fallthrough
CT: control target
= control target key end

     0   :  { %vm211_vm0 = vcmask 523264   ;;  %vm224_vm1 = vcmask 1048064   ;;  %s1756_s0 = inlined_call_operand.vmem [shape: f32[32,128], index: 0, kind: input, shape index: {}]   ;;  %s1757_s1 = inlined_call_operand.vmem [shape: f32[2,32], index: 1, kind: input, shape index: {}]   ;;  %s1758_s2 = inlined_call_operand.vmem [shape: f32[32,2], index: 2, kind: input, shape index: {}]   ;;  %s1759_s3 = inlined_call_operand.vmem [shape: f32[128,2], index: 3, kind: input, shape index: {}]   ;;  %s1760_s4 = inlined_call_operand.vmem [shape: f32[2,128], index: 4, kind: input, shape index: {}]   ;;  %s1761_s5 = inlined_call_operand.vmem [shape: f32[1,32], index: 5, kind: input, shape index: {}]   ;;  %s1762_s6 = inlined_call_operand.vmem [shape: f32[128,64], index: 6, kind: input, shape index: {}]   ;;  %s1763_s7 = inlined_call_operand.vmem [shape: f32[32,32], index: 7, kind: input, shape index: {}]   ;;  %s1764_s8 = inlined_call_operand.vmem [shape: f32[32,32], index: 8, kind: input, shape index: {}]   ;;  %s1765_s9 = inlined_call_operand.vmem [shape: f32[32,1], index: 9, kind: input, shape index: {}]   ;;  %s1766_s10 = inlined_call_operand.vmem [shape: f32[32,128], index: 10, kind: output, shape index: {}]  }
   0x1   :  { %v1420_v0 = vld [vmem:[%s1762_s6] sm:$0xff]  ;;  %v1425_v1 = vld [vmem:[%s1762_s6 + $0x8] sm:$0xff]  ;;  %v1430_v2 = vld [vmem:[%s1762_s6 + $0x10] sm:$0xff] }
   0x2   :  { %v1435_v3 = vld [vmem:[%s1762_s6 + $0x18] sm:$0xff]  ;;  %v1440_v4 = vld [vmem:[%s1762_s6 + $0x20] sm:$0xff]  ;;  %v1445_v5 = vld [vmem:[%s1762_s6 + $0x28] sm:$0xff] }
   0x3   :  { %v1450_v6 = vld [vmem:[%s1762_s6 + $0x30] sm:$0xff]  ;;  %v1455_v7 = vld [vmem:[%s1762_s6 + $0x38] sm:$0xff]  ;;  %v1460_v8 = vld [vmem:[%s1762_s6 + $0x40] sm:$0xff] }
   0x4   :  { %v1465_v9 = vld [vmem:[%s1762_s6 + $0x48] sm:$0xff]  ;;  %v1470_v10 = vld [vmem:[%s1762_s6 + $0x50] sm:$0xff]  ;;  %v1475_v11 = vld [vmem:[%s1762_s6 + $0x58] sm:$0xff] }
   0x5   :  { %v1480_v12 = vld [vmem:[%s1762_s6 + $0x60] sm:$0xff]  ;;  %v1485_v13 = vld [vmem:[%s1762_s6 + $0x68] sm:$0xff]  ;;  %v1490_v14 = vld [vmem:[%s1762_s6 + $0x70] sm:$0xff] }
   0x6   :  { %v1495_v15 = vld [vmem:[%s1762_s6 + $0x78] sm:$0xff]  ;;  %v1505_v17 = vld [vmem:[%s1756_s0 + $0x10] sm:$0xff]  ;;  %v1517_v21 = vld [vmem:[%s1756_s0] sm:$0xff] }
   0x7   :  { %v1500_v16 = vld [vmem:[%s1756_s0 + $0x18] sm:$0xff]  ;;  %v218_v19 = vsel %vm211_vm0, %v1505_v17, -inf }
   0x8   :  { %v221_v18 = vsel %vm211_vm0, %v1500_v16, -inf  ;;  %v125_v20 = vld [vmem:[%s1759_s3 + $0x78] sm:$0xff]  ;;  %219 = vmax.xlane.f32.xlu1 %v218_v19 }
   0x9   :  { %222 = vmax.xlane.f32.xlu0 %v221_v18 }
   0xa   :  { %105 = vsyncadd [#allocation3], 2048  ;;  %v234_v22 = vsel %vm224_vm1, %v1500_v16, -inf  ;;  %v231_v23 = vsel %vm224_vm1, %v1505_v17, -inf  ;;  %1179 = vmatprep.subr.mxu0 %v125_v20  ;;  %v124_v24 = vld [vmem:[%s1759_s3 + $0x70] sm:$0xff]  ;;  %1211 = vmatprep.mubr.f32.mxu0 %v1517_v21  ;;  %v1530_v25 = vld [vmem:[%s1756_s0 + $0x8] sm:$0xff] }
   0xb   :  { %1180 = vmatpush3.msra.mxu0 %v125_v20  ;;  %v123_v26 = vld [vmem:[%s1759_s3 + $0x68] sm:$0xff]  ;;  %v228_v27 = vsel %vm224_vm1, %v1530_v25, -inf  ;;  %v215_v28 = vsel %vm211_vm0, %v1530_v25, -inf  ;;  %v122_v29 = vld [vmem:[%s1759_s3 + $0x60] sm:$0xff]  ;;  %v121_v30 = vld [vmem:[%s1759_s3 + $0x58] sm:$0xff]  ;;  %v225_v31 = vsel %vm224_vm1, %v1517_v21, -inf }
   0xc   :  { %1181 = vmatprep.subr.mxu0 %v124_v24  ;;  %232 = vmax.xlane.f32.xlu1 %v231_v23  ;;  %v212_v32 = vsel %vm211_vm0, %v1517_v21, -inf  ;;  %v120_v33 = vld [vmem:[%s1759_s3 + $0x50] sm:$0xff]  ;;  %v119_v34 = vld [vmem:[%s1759_s3 + $0x48] sm:$0xff]  ;;  %v118_v35 = vld [vmem:[%s1759_s3 + $0x40] sm:$0xff]  ;;  %v1356_v44 = vmov 0.0   ;;  %vm237_vm2 = vcmask 7168  }
   0xd   :  { %235 = vmax.xlane.f32.xlu0 %v234_v22  ;;  %1182 = vmatpush3.msra.mxu0 %v124_v24  ;;  %v117_v36 = vld [vmem:[%s1759_s3 + $0x38] sm:$0xff]  ;;  %v116_v37 = vld [vmem:[%s1759_s3 + $0x30] sm:$0xff]  ;;  %v115_v38 = vld [vmem:[%s1759_s3 + $0x28] sm:$0xff]  ;;  %vm1357_vm3 = vmmov 0   ;;  %vm258_vm4 = vcmask 15360   ;;  %vm264_vm5 = vcmask 261120  }
   0xe   :  { %1183 = vmatprep.subr.mxu0 %v123_v26  ;;  %v114_v39 = vld [vmem:[%s1759_s3 + $0x20] sm:$0xff]  ;;  %v113_v40 = vld [vmem:[%s1759_s3 + $0x18] sm:$0xff]  ;;  %v112_v41 = vld [vmem:[%s1759_s3 + $0x10] sm:$0xff]  ;;  %1217 = vmatprep.subr.mxu1 %v1356_v44  ;;  %vm355_vm6 = vcmask 1041408   ;;  %s1359_s29 = smov 126   ;;  %s1360_s12 = smov 64  }
   0xf   :  { %1184 = vmatpush3.msra.mxu0 %v123_v26  ;;  %v111_v42 = vld [vmem:[%s1759_s3 + $0x8] sm:$0xff]  ;;  %v110_v43 = vld [vmem:[%s1759_s3] sm:$0xff]  ;;  %1225 = vmatprep.mubr.msk.f32.mxu1 %vm1357_vm3, %v1356_v44  ;;  %s1358_s3 = smov 2   ;;  %vm689_vm7 = vcmask 1040384  }
  0x10   :  { %229 = vmax.xlane.f32.xlu1 %v228_v27  ;;  %1185 = vmatprep.subr.mxu0 %v122_v29  ;;  %v263_v23 = vld [vmem:[%s1757_s1] sm:$0x3] }
  0x11   :  { %216 = vmax.xlane.f32.xlu0 %v215_v28  ;;  %1186 = vmatpush3.msra.mxu0 %v122_v29  ;;  %v339_v26 = vld [vmem:[%s1758_s2] sm:$0xff] }
  0x12   :  { %1187 = vmatprep.subr.mxu0 %v121_v30 }
  0x13   :  { %1188 = vmatpush3.msra.mxu0 %v121_v30  ;;  %v340_v30 = vld [vmem:[%s1758_s2 + $0x8] sm:$0xff] }
  0x14   :  { %226 = vmax.xlane.f32.xlu1 %v225_v31  ;;  %1189 = vmatprep.subr.mxu0 %v120_v33  ;;  %v341_v31 = vld [vmem:[%s1758_s2 + $0x10] sm:$0xff] }
  0x15   :  { %213 = vmax.xlane.f32.xlu0 %v212_v32  ;;  %1190 = vmatpush3.msra.mxu0 %v120_v33  ;;  %v342_v32 = vld [vmem:[%s1758_s2 + $0x18] sm:$0xff] }
  0x16   :  { %1191 = vmatprep.subr.mxu0 %v119_v34 }
  0x17   :  { %1192 = vmatpush3.msra.mxu0 %v119_v34 }
  0x18   :  { %1193 = vmatprep.subr.mxu0 %v118_v35 }
  0x19   :  { %1194 = vmatpush3.msra.mxu0 %v118_v35 }
  0x1a   :  { %1195 = vmatprep.subr.mxu0 %v117_v36 }
  0x1b   :  { %1196 = vmatpush3.msra.mxu0 %v117_v36 }
  0x1c   :  { %1197 = vmatprep.subr.mxu0 %v116_v37 }
  0x1d   :  { %1198 = vmatpush3.msra.mxu0 %v116_v37  ;;  %v488_v37 = vld [vmem:[%s1760_s4] sm:$0x3] }
  0x1e   :  { %1199 = vmatprep.subr.mxu0 %v115_v38 }
  0x1f   :  { %1200 = vmatpush3.msra.mxu0 %v115_v38 }
  0x20   :  { %1201 = vmatprep.subr.mxu0 %v114_v39 }
  0x21   :  { %1202 = vmatpush3.msra.mxu0 %v114_v39 }
  0x22   :  { %1203 = vmatprep.subr.mxu0 %v113_v40 }
  0x23   :  { %1204 = vmatpush3.msra.mxu0 %v113_v40 }
  0x24   :  { %1205 = vmatprep.subr.mxu0 %v112_v41 }
  0x25   :  { %1206 = vmatpush3.msra.mxu0 %v112_v41 }
  0x26   :  { %1207 = vmatprep.subr.mxu0 %v111_v42 }
  0x27   :  { %1208 = vmatpush3.msra.mxu0 %v111_v42 }
  0x28   :  { %1209 = vmatprep.subr.mxu0 %v110_v43 }
  0x29   :  { %1210 = vmatpush3.msra.mxu0 %v110_v43 }
  0x2a   :  { %1212 = vmatmul.mubr.f32.vlgmr.msra.gmra.mxu0 %v1530_v25 }
  0x2b   :  { %1214 = vmatprep.mubr.f32.mxu0 %v1505_v17 }
  0x2e   :  { %1215 = vmatmul.mubr.f32.gmra.mxu0 %v1500_v16 }
  0x91   :  { %v220_v46 = vpop.xlane.xlu1 %219 }
  0x92   :  { %v223_v45 = vpop.xlane.xlu0 %222 }
  0x95   :  { %v233_v48 = vpop.xlane.xlu1 %232 }
  0x96   :  { %v236_v47 = vpop.xlane.xlu0 %235  ;;  %v240_v49 = vsel %vm237_vm2, %v220_v46, %v233_v48 }
  0x97   :  { %v241_v50 = vsel %vm237_vm2, %v223_v45, %v236_v47  ;;  %250 = vrot.lane.b32.xlu1 %v240_v49, %s1358_s3 }
  0x98   :  { %252 = vrot.lane.b32.xlu0 %v241_v50, %s1358_s3 }
  0x99   :  { %v230_v51 = vpop.xlane.xlu1 %229 }
  0x9a   :  { %v217_v52 = vpop.xlane.xlu0 %216 }
  0x9b   :  { %v239_v53 = vsel %vm237_vm2, %v217_v52, %v230_v51 }
  0x9c   :  { %248 = vrot.lane.b32.xlu1 %v239_v53, %s1358_s3 }
  0x9d   :  { %v227_v54 = vpop.xlane.xlu1 %226 }
  0x9e   :  { %v214_v55 = vpop.xlane.xlu0 %213 }
  0x9f   :  { %v238_v56 = vsel %vm237_vm2, %v214_v55, %v227_v54 }
  0xa0   :  { %246 = vrot.lane.b32.xlu1 %v238_v56, %s1358_s3 }
  0xea   :  { %v1213_v57 = vpop.f32.mrf.mxu0 }
  0xec   :  { %v192_v58 = vpop.f32.mrf.mxu0 }
  0xee   :  { %v1216_v59 = vpop.f32.mrf.mxu0 }
  0xf0   :  { %v202_v60 = vpop.f32.mrf.mxu0 }
 0x109   :  { %v251_v61 = vpop.permute.xlu1 %250 }
 0x10a   :  { %v253_v62 = vpop.permute.xlu0 %252  ;;  %v261_v18 = vsel %vm258_vm4, %v202_v60, %v251_v61 }
 0x10b   :  { %v262_v63 = vsel %vm258_vm4, %v1216_v59, %v253_v62 }
 0x10c   :  { %1218 = vmatpush3.msra.mxu1 %v262_v63 }
 0x10d   :  { %1219 = vmatprep.subr.mxu1 %v1356_v44 }
 0x10e   :  { %v249_v19 = vpop.permute.xlu1 %248  ;;  %1220 = vmatpush3.msra.mxu1 %v261_v18 }
 0x10f   :  { %1221 = vmatprep.subr.mxu1 %v1356_v44  ;;  %v260_v20 = vsel %vm258_vm4, %v1213_v57, %v249_v19 }
 0x110   :  { %1222 = vmatpush3.msra.mxu1 %v260_v20 }
 0x111   :  { %1223 = vmatprep.subr.mxu1 %v1356_v44 }
 0x112   :  { %v247_v22 = vpop.permute.xlu1 %246 }
 0x113   :  { %v259_v24 = vsel %vm258_vm4, %v192_v58, %v247_v22 }
 0x114   :  { %1224 = vmatpush3.msra.mxu1 %v259_v24 }
 0x115   :  { %1226 = vmatmul.mubr.msk.f32.vlgmr.msra.gmra.mxu1 %vm264_vm5, %v263_v23 }
 0x116   :  { %1230 = vmatprep.mubr.msk.f32.mxu1 %vm258_vm4, %v339_v26 }
 0x1d5   :  { %v334_v27 = vpop.f32.mrf.mxu1 }
 0x1d6   :  { %v338_v28 = vmax.f32 %v334_v27, 0.0 }
 0x1d7   :  { %v1227_v29 = vpop.f32.mrf.mxu1 }
 0x1d8   :  { %1228 = vmatprep.subr.msk.mxu1 %vm355_vm6, %v338_v28 }
 0x1d9   :  { %1229 = vmatpush3.msk.msra.mxu1 %vm355_vm6, %v338_v28 }
 0x1da   :  { %1231 = vmatmul.mubr.msk.f32.vlgmr.msra.gmra.mxu1 %vm258_vm4, %v340_v30  ;;  %1236 = vmatprep.subr.msk.mxu1 %vm355_vm6, %v488_v37  ;;  %v593_v30 = vld [vmem:[%s1761_s5] sm:$0x1] }
 0x1db   :  { %1233 = vmatprep.mubr.msk.f32.mxu1 %vm258_vm4, %v341_v31  ;;  %1237 = vmatpush3.msk.msra.mxu1 %vm355_vm6, %v488_v37 }
 0x1dc   :  { %1244 = vmatprep.subr.mxu1 %v1356_v44 }
 0x1de   :  { %1234 = vmatmul.mubr.msk.f32.gmra.mxu1 %vm258_vm4, %v342_v32 }
 0x29a   :  { %v1232_v33 = vpop.f32.mrf.mxu1 }
 0x29b   :  { %450 = vrot.lane.b32.xlu1 %v1232_v33, %s1359_s29 }
 0x29c   :  { %v425_v34 = vpop.f32.mrf.mxu1 }
 0x29d   :  { %448 = vrot.lane.b32.xlu0 %v425_v34, %s1359_s29 }
 0x29e   :  { %v1235_v35 = vpop.f32.mrf.mxu1 }
 0x29f   :  { %454 = vrot.lane.b32.xlu1 %v1235_v35, %s1359_s29 }
 0x2a0   :  { %v435_v36 = vpop.f32.mrf.mxu1 }
 0x2a1   :  { %452 = vrot.lane.b32.xlu0 %v435_v36, %s1359_s29 }
 0x30d   :  { %v451_v38 = vpop.permute.xlu1 %450 }
 0x30e   :  { %v461_v39 = vadd.f32 %v1232_v33, %v451_v38 }
 0x30f   :  { %v449_v40 = vpop.permute.xlu0 %448 }
 0x310   :  { %v1087_v41 = vmul.f32 -1.442695, %v461_v39  ;;  %v460_v42 = vadd.f32 %v449_v40, %v425_v34 }
 0x311   :  { %v455_v43 = vpop.permute.xlu1 %454 }
 0x312   :  { %1324 = vpow2.f32 %v1087_v41  ;;  %v1086_v45 = vmul.f32 -1.442695, %v460_v42  ;;  %v463_v46 = vadd.f32 %v1235_v35, %v455_v43 }
 0x313   :  { %v453_v47 = vpop.permute.xlu0 %452 }
 0x314   :  { %1326 = vpow2.f32 %v1086_v45  ;;  %v1089_v48 = vmul.f32 -1.442695, %v463_v46  ;;  %v462_v49 = vadd.f32 %v453_v47, %v435_v36 }
 0x316   :  { %1328 = vpow2.f32 %v1089_v48  ;;  %v1088_v50 = vmul.f32 -1.442695, %v462_v49 }
 0x318   :  { %1330 = vpow2.f32 %v1088_v50 }
 0x31f   :  { %v1325_v51 = vpop.eup %1324 }
 0x320   :  { %v477_v53 = vadd.f32 1.0, %v1325_v51 }
 0x321   :  { %v1327_v52 = vpop.eup %1326 }
 0x322   :  { %v476_v54 = vadd.f32 1.0, %v1327_v52 }
 0x323   :  { %v1329_v55 = vpop.eup %1328 }
 0x324   :  { %1332 = vrcp.f32 %v476_v54  ;;  %v479_v57 = vadd.f32 1.0, %v1329_v55 }
 0x325   :  { %v1331_v56 = vpop.eup %1330  ;;  %1334 = vrcp.f32 %v477_v53 }
 0x326   :  { %v478_v58 = vadd.f32 1.0, %v1331_v56 }
 0x328   :  { %1336 = vrcp.f32 %v478_v58 }
 0x329   :  { %1338 = vrcp.f32 %v479_v57 }
 0x331   :  { %v1333_v59 = vpop.eup %1332 }
 0x332   :  { %v1335_v60 = vpop.eup %1334  ;;  %1238 = vmatprep.mubr.msk.f32.mxu1 %vm258_vm4, %v1333_v59 }
 0x333   :  { %1239 = vmatmul.mubr.msk.f32.vlgmr.msra.gmra.mxu1 %vm258_vm4, %v1335_v60 }
 0x335   :  { %v1337_v61 = vpop.eup %1336 }
 0x336   :  { %v1339_v62 = vpop.eup %1338  ;;  %1241 = vmatprep.mubr.msk.f32.mxu1 %vm258_vm4, %v1337_v61 }
 0x337   :  { %1242 = vmatmul.mubr.msk.f32.gmra.mxu1 %vm258_vm4, %v1339_v62 }
 0x338   :  { %1252 = vmatprep.mubr.msk.f32.mxu1 %vm1357_vm3, %v1356_v44 }
 0x3f3   :  { %v1240_v63 = vpop.f32.mrf.mxu1 }
 0x3f4   :  { %v590_v24 = vmul.f32 %v1240_v63, %v1530_v25 }
 0x3f5   :  { %v570_v18 = vpop.f32.mrf.mxu1 }
 0x3f6   :  { %v589_v20 = vmul.f32 %v570_v18, %v1517_v21 }
 0x3f7   :  { %v1243_v19 = vpop.f32.mrf.mxu1 }
 0x3f8   :  { %v592_v22 = vmul.f32 %v1243_v19, %v1500_v16  ;;  %v667_v27 = vmax.f32 %v589_v20, %v590_v24 }
 0x3f9   :  { %v580_v23 = vpop.f32.mrf.mxu1 }
 0x3fa   :  { %v591_v26 = vmul.f32 %v580_v23, %v1505_v17  ;;  %1245 = vmatpush3.msra.mxu1 %v592_v22 }
 0x3fb   :  { %1246 = vmatprep.subr.mxu1 %v1356_v44 }
 0x3fc   :  { %v668_v28 = vmax.f32 %v591_v26, %v592_v22  ;;  %1247 = vmatpush3.msra.mxu1 %v591_v26 }
 0x3fd   :  { %1248 = vmatprep.subr.mxu1 %v1356_v44 }
 0x3fe   :  { %v669_v29 = vmax.f32 %v667_v27, %v668_v28  ;;  %1249 = vmatpush3.msra.mxu1 %v590_v24 }
 0x3ff   :  { %1250 = vmatprep.subr.mxu1 %v1356_v44 }
 0x400   :  { %v670_v31 = vrot.slane %v669_v29, 4  ;;  %1251 = vmatpush3.msra.mxu1 %v589_v20 }
 0x401   :  { %1253 = vmatmul.mubr.msk.f32.vlgmr.msra.gmra.mxu1 %vm264_vm5, %v593_v30  ;;  %1255 = vmatprep.subr.mxu1 %v1356_v44 }
 0x402   :  { %v671_v32 = vmax.f32 %v669_v29, %v670_v31  ;;  %1287 = vmatprep.mubr.msk.f32.mxu1 %vm1357_vm3, %v1356_v44 }
 0x404   :  { %v672_v33 = vrot.slane %v671_v32, 2 }
 0x406   :  { %v673_v34 = vmax.f32 %v671_v32, %v672_v33 }
 0x408   :  { %v674_v35 = vrot.slane %v673_v34, 1 }
 0x40a   :  { %v675_v36 = vmax.f32 %v673_v34, %v674_v35 }
 0x40c   :  { %677 = vrot.lane.b32.xlu1 %v675_v36, %s1360_s12 }
 0x47e   :  { %v678_v41 = vpop.permute.xlu1 %677 }
 0x4c1   :  { %v663_v37 = vpop.f32.mrf.mxu1 }
 0x4c2   :  { %682 = vrot.lane.b32.xlu0 %v663_v37, %s1360_s12  ;;  %v680_v43 = vsel %vm211_vm0, %v663_v37, %v678_v41 }
 0x4c3   :  { %v1254_v38 = vpop.f32.mrf.mxu1 }
 0x534   :  { %v683_v39 = vpop.permute.xlu0 %682 }
 0x535   :  { %v685_v40 = vsel %vm211_vm0, %v683_v39, %v675_v36 }
 0x536   :  { %v687_v42 = vrot.slane %v685_v40, 7 }
 0x538   :  { %v690_v45 = vsel %vm689_vm7, %v680_v43, %v687_v42 }
 0x539   :  { %1354 = dma.done.wait [#allocation3], 2048 }
 0x53a   :  { %1355 = vsyncadd [#allocation3], 4294965248  ;;  %1256 = vmatpush3.msra.mxu1 %v1495_v15  ;;  %1290 = vmatprep.subr.mxu0 %v1500_v16  ;;  %v1024_v15 = vld [vmem:[%s1765_s9 + $0x10] sm:$0xff]  ;;  %v792_v46 = vlaneseq  ;;  %v821_v32 = vld [vmem:[%s1763_s7 + $0x8] sm:$0xff] }
 0x53b   :  { %1257 = vmatprep.subr.mxu1 %v1356_v44  ;;  %1291 = vmatpush3.msra.mxu0 %v1500_v16  ;;  %v822_v33 = vld [vmem:[%s1763_s7 + $0x10] sm:$0xff]  ;;  %v823_v34 = vld [vmem:[%s1763_s7 + $0x18] sm:$0xff] }
 0x53c   :  { %1258 = vmatpush3.msra.mxu1 %v1490_v14  ;;  %1292 = vmatprep.subr.mxu0 %v1505_v17  ;;  %v1022_v14 = vld [vmem:[%s1765_s9] sm:$0xff]  ;;  %v793_v47 = vshrl.u32 %v792_v46, 7 }
 0x53d   :  { %1259 = vmatprep.subr.mxu1 %v1356_v44  ;;  %1293 = vmatpush3.msra.mxu0 %v1505_v17 }
 0x53e   :  { %1260 = vmatpush3.msra.mxu1 %v1485_v13  ;;  %1294 = vmatprep.subr.mxu0 %v1530_v25  ;;  %v1361_v13 = vmov 0   ;;  %v794_v48 = vsub.s32 0, %v793_v47 }
 0x53f   :  { %1261 = vmatprep.subr.mxu1 %v1356_v44  ;;  %1295 = vmatpush3.msra.mxu0 %v1530_v25 }
 0x540   :  { %1262 = vmatpush3.msra.mxu1 %v1480_v12  ;;  %1296 = vmatprep.subr.mxu0 %v1517_v21  ;;  %v1023_v12 = vld [vmem:[%s1765_s9 + $0x8] sm:$0xff] }
 0x541   :  { %1263 = vmatprep.subr.mxu1 %v1356_v44  ;;  %1297 = vmatpush3.msra.mxu0 %v1517_v21 }
 0x542   :  { %1264 = vmatpush3.msra.mxu1 %v1475_v11  ;;  %v820_v11 = vld [vmem:[%s1763_s7] sm:$0xff]  ;;  %1341 = vset.pattern.permute.xlu1 %v1361_v13 }
 0x543   :  { %1265 = vmatprep.subr.mxu1 %v1356_v44  ;;  %1340 = vset.pattern.permute.xlu0 %v1361_v13 }
 0x544   :  { %1266 = vmatpush3.msra.mxu1 %v1470_v10  ;;  %v827_v10 = vld [vmem:[%s1764_s8 + $0x18] sm:$0xff]  ;;  %1033 = vperm.xlu1 %1341, %v1023_v12  }
 0x545   :  { %1267 = vmatprep.subr.mxu1 %v1356_v44 }
 0x546   :  { %1268 = vmatpush3.msra.mxu1 %v1465_v9  ;;  %v826_v9 = vld [vmem:[%s1764_s8 + $0x10] sm:$0xff] }
 0x547   :  { %1269 = vmatprep.subr.mxu1 %v1356_v44 }
 0x548   :  { %1270 = vmatpush3.msra.mxu1 %v1460_v8  ;;  %1038 = vperm.xlu1 %1341, %v1024_v15  }
 0x549   :  { %1271 = vmatprep.subr.mxu1 %v1356_v44 }
 0x54a   :  { %1272 = vmatpush3.msra.mxu1 %v1455_v7 }
 0x54b   :  { %1273 = vmatprep.subr.mxu1 %v1356_v44 }
 0x54c   :  { %1274 = vmatpush3.msra.mxu1 %v1450_v6 }
 0x54d   :  { %1275 = vmatprep.subr.mxu1 %v1356_v44 }
 0x54e   :  { %1276 = vmatpush3.msra.mxu1 %v1445_v5 }
 0x54f   :  { %1277 = vmatprep.subr.mxu1 %v1356_v44 }
 0x550   :  { %1278 = vmatpush3.msra.mxu1 %v1440_v4 }
 0x551   :  { %1279 = vmatprep.subr.mxu1 %v1356_v44 }
 0x552   :  { %1280 = vmatpush3.msra.mxu1 %v1435_v3 }
 0x553   :  { %1281 = vmatprep.subr.mxu1 %v1356_v44 }
 0x554   :  { %1282 = vmatpush3.msra.mxu1 %v1430_v2  ;;  %v824_v2 = vld [vmem:[%s1764_s8] sm:$0xff] }
 0x555   :  { %1283 = vmatprep.subr.mxu1 %v1356_v44  ;;  %1298 = vmatprep.mubr.msk.f32.mxu0 %vm264_vm5, %v824_v2 }
 0x556   :  { %1284 = vmatpush3.msra.mxu1 %v1425_v1  ;;  %v825_v1 = vld [vmem:[%s1764_s8 + $0x8] sm:$0xff] }
 0x557   :  { %1285 = vmatprep.subr.mxu1 %v1356_v44  ;;  %1299 = vmatmul.mubr.msk.f32.vlgmr.msra.gmra.mxu0 %vm264_vm5, %v825_v1  ;;  %v1025_v44 = vld [vmem:[%s1765_s9 + $0x18] sm:$0xff] }
 0x558   :  { %1286 = vmatpush3.msra.mxu1 %v1420_v0  ;;  %1301 = vmatprep.mubr.msk.f32.mxu0 %vm264_vm5, %v826_v9 }
 0x559   :  { %1288 = vmatmul.mubr.f32.vlgmr.msra.gmra.mxu1 %v690_v45  ;;  %1043 = vperm.xlu1 %1341, %v1025_v44  }
 0x55b   :  { %1302 = vmatmul.mubr.msk.f32.gmra.mxu0 %vm264_vm5, %v827_v10 }
 0x55c   :  { %1312 = vmatprep.mubr.msk.f32.mxu0 %vm264_vm5, %v820_v11 }
 0x5bf   :  { %v1034_v37 = vpop.permute.xlu1 %1033 }
 0x5c3   :  { %v1039_v40 = vpop.permute.xlu1 %1038 }
 0x5d4   :  { %v1044_v1 = vpop.permute.xlu1 %1043 }
 0x617   :  { %v1300_v35 = vpop.f32.mrf.mxu0 }
 0x619   :  { %v776_v5 = vpop.f32.mrf.mxu1  ;;  %v906_v36 = vpop.f32.mrf.mxu0 }
 0x61a   :  { %v1096_v6 = vmul.f32 -1.442695, %v776_v5 }
 0x61b   :  { %v1289_v4 = vpop.f32.mrf.mxu1  ;;  %v1303_v38 = vpop.f32.mrf.mxu0 }
 0x61c   :  { %1342 = vpow2.f32 %v1096_v6 }
 0x61d   :  { %v916_v39 = vpop.f32.mrf.mxu0 }
 0x629   :  { %v1343_v7 = vpop.eup %1342 }
 0x62a   :  { %v783_v8 = vadd.f32 1.0, %v1343_v7 }
 0x62c   :  { %1344 = vrcp.f32 %v783_v8 }
 0x639   :  { %v1345_v0 = vpop.eup %1344 }
 0x63a   :  { %v787_v3 = vrot.slane %v1345_v0, 1 }
 0x63c   :  { %788 = vrot.lane.b32.xlu0 %v787_v3, %s1360_s12 }
 0x640   :  { %1028 = vperm.xlu0 %1340, %v1022_v14  }
 0x6ae   :  { %v789_v49 = vpop.permute.xlu0 %788 }
 0x6af   :  { %v791_v50 = vsel %vm211_vm0, %v1345_v0, %v789_v49 }
 0x6b0   :  { %v795_v51 = vrot.slane %v791_v50, %v794_v48 }
 0x6b2   :  { %v799_v52 = vmul.f32 %v795_v51, %v1500_v16  ;;  %v798_v53 = vmul.f32 %v795_v51, %v1505_v17  ;;  %v797_v54 = vmul.f32 %v795_v51, %v1530_v25  ;;  %v796_v55 = vmul.f32 %v795_v51, %v1517_v21 }
 0x6b4   :  { %v803_v56 = vmul.f32 0.5, %v799_v52  ;;  %v802_v57 = vmul.f32 0.5, %v798_v53  ;;  %v801_v58 = vmul.f32 0.5, %v797_v54  ;;  %v800_v59 = vmul.f32 0.5, %v796_v55 }
 0x6b6   :  { %1346 = vtanh.f32 %v803_v56 }
 0x6b7   :  { %1348 = vtanh.f32 %v802_v57 }
 0x6b8   :  { %1350 = vtanh.f32 %v801_v58 }
 0x6b9   :  { %1352 = vtanh.f32 %v800_v59 }
 0x6bb   :  { %v1029_v45 = vpop.permute.xlu0 %1028 }
 0x6c3   :  { %v1347_v60 = vpop.eup %1346 }
 0x6c4   :  { %v1349_v61 = vpop.eup %1348  ;;  %v811_v62 = vadd.f32 1.0, %v1347_v60 }
 0x6c5   :  { %v1351_v63 = vpop.eup %1350  ;;  %v810_v18 = vadd.f32 1.0, %v1349_v61 }
 0x6c6   :  { %v1353_v19 = vpop.eup %1352  ;;  %v815_v20 = vmul.f32 0.5, %v811_v62  ;;  %v809_v22 = vadd.f32 1.0, %v1351_v63 }
 0x6c7   :  { %v814_v23 = vmul.f32 0.5, %v810_v18  ;;  %v808_v24 = vadd.f32 1.0, %v1353_v19 }
 0x6c8   :  { %v819_v26 = vmul.f32 %v815_v20, %v795_v51  ;;  %v813_v27 = vmul.f32 0.5, %v809_v22 }
 0x6c9   :  { %v818_v28 = vmul.f32 %v814_v23, %v795_v51  ;;  %v812_v29 = vmul.f32 0.5, %v808_v24 }
 0x6ca   :  { %1304 = vmatprep.subr.mxu0 %v819_v26  ;;  %v817_v30 = vmul.f32 %v813_v27, %v795_v51 }
 0x6cb   :  { %1305 = vmatpush3.msra.mxu0 %v819_v26  ;;  %v816_v31 = vmul.f32 %v812_v29, %v795_v51 }
 0x6cc   :  { %1306 = vmatprep.subr.mxu0 %v818_v28 }
 0x6cd   :  { %1307 = vmatpush3.msra.mxu0 %v818_v28 }
 0x6ce   :  { %1308 = vmatprep.subr.mxu0 %v817_v30 }
 0x6cf   :  { %1309 = vmatpush3.msra.mxu0 %v817_v30 }
 0x6d0   :  { %1310 = vmatprep.subr.mxu0 %v816_v31 }
 0x6d1   :  { %1311 = vmatpush3.msra.mxu0 %v816_v31 }
 0x6d2   :  { %1313 = vmatmul.mubr.msk.f32.vlgmr.msra.gmra.mxu0 %vm264_vm5, %v821_v32 }
 0x6d3   :  { %1315 = vmatprep.mubr.msk.f32.mxu0 %vm264_vm5, %v822_v33 }
 0x6d6   :  { %1316 = vmatmul.mubr.msk.f32.gmra.mxu0 %vm264_vm5, %v823_v34 }
 0x792   :  { %v1314_v41 = vpop.f32.mrf.mxu0 }
 0x793   :  { %v1009_v42 = vadd.f32 %v1314_v41, %v1300_v35 }
 0x794   :  { %v1003_v43 = vpop.f32.mrf.mxu0 }
 0x795   :  { %v1047_v5 = vadd.f32 %v1034_v37, %v1009_v42  ;;  %v1004_v6 = vadd.f32 %v1003_v43, %v906_v36 }
 0x796   :  { %v1317_v4 = vpop.f32.mrf.mxu0 }
 0x797   :  { %v1051_v7 = vmax.f32 %v1047_v5, 0.0  ;;  %v1046_v8 = vadd.f32 %v1029_v45, %v1004_v6  ;;  %v1019_v2 = vadd.f32 %v1317_v4, %v1303_v38 }
 0x798   :  { %v1013_v0 = vpop.f32.mrf.mxu0 }
 0x799   :  { %v1055_v3 = vadd.f32 %v1051_v7, %v1530_v25  ;;  %v1050_v9 = vmax.f32 %v1046_v8, 0.0  ;;  %v1049_v10 = vadd.f32 %v1044_v1, %v1019_v2  ;;  %v1014_v11 = vadd.f32 %v1013_v0, %v916_v39 }
 0x79b   :  { %1059 = vst [vmem:[%s1766_s10 + $0x8] sm:$0xff] %v1055_v3  ;;  %v1054_v12 = vadd.f32 %v1050_v9, %v1517_v21  ;;  %v1053_v13 = vmax.f32 %v1049_v10, 0.0  ;;  %v1048_v14 = vadd.f32 %v1039_v40, %v1014_v11 }
 0x79d   :  { %1058 = vst [vmem:[%s1766_s10] sm:$0xff] %v1054_v12  ;;  %v1057_v15 = vadd.f32 %v1053_v13, %v1500_v16  ;;  %v1052_v44 = vmax.f32 %v1048_v14, 0.0 }
 0x79f   :  { %1061 = vst [vmem:[%s1766_s10 + $0x18] sm:$0xff] %v1057_v15  ;;  %v1056_v25 = vadd.f32 %v1052_v44, %v1505_v17 }
 0x7a1   :  { %1060 = vst [vmem:[%s1766_s10 + $0x10] sm:$0xff] %v1056_v25 }
 0x7a2   :  { %1066 = vsyncmov [#allocation3] }
 0x7a5   :  { %s1067_s14 = vpop.sfrf %1066 }
 0x7a6   :  { %p1105_p0 = scmp.ne.s32.totalorder %s1067_s14, 0 }
 0x7a8   :  { %1071 = shalt.err (%p1105_p0)  }

</bundles_post_ra>
